<compile_context>
chip_gen: v7x
topology: tpu7x:2x2x1
jax: 0.10.0
libtpu: 0.0.40
codegen_flags: <defaults>
</compile_context>

<pallas_src>
import math

import jax
import jax.numpy as jnp
from jax.experimental import pallas as pl
from jax.experimental.pallas import tpu as pltpu


# 48 MiB: above the 16/32 MiB scoped defaults on v5e/v6e, with headroom under
# v7x's 64 MiB physical VMEM.
_VMEM_LIMIT_BYTES = 48 * 1024 * 1024


def _round_up(x, m):
    return ((x + m - 1) // m) * m


def _pick_tile(n, max_tile):
    """Largest tile <= max_tile that evenly divides n.

    Returns n itself (single full block) when n <= max_tile or when no
    multiple of 128 divides n; otherwise a multiple of 128 so tiled blocks
    satisfy the (8, 128) layout rule and stay lane-dense.
    """
    if n <= max_tile:
        return n
    t = (max_tile // 128) * 128
    while t >= 128:
        if n % t == 0:
            return t
        t -= 128
    return n


# ----------------------------- Pallas kernels -----------------------------

def gate_kernel(x_ref, w_ref, o_ref):
    # x: (tn, D), w: (E, D)  ->  sigmoid(w @ x^T): (E, tn)
    # Output is token-major in the lane dimension (lane-dense store) and is
    # already the layout top_k wants, so no host-side transpose is needed.
    logits = jax.lax.dot_general(
        w_ref[...], x_ref[...],
        dimension_numbers=(((1,), (1,)), ((), ())),
        preferred_element_type=jnp.float32)
    o_ref[...] = jax.nn.sigmoid(logits)


def expert_mlp_kernel(x_ref, wg_ref, wu_ref, wd_ref, s_ref, o_ref, acc_ref):
    # grid = (E, H // tH); expert axis "parallel", H axis "arbitrary" (reduction).
    # Per step (expert dim squeezed):
    #   x: (Cp, D), wg/wu: (tH, D), wd: (D, tH), s: (Cp, 1), o: (Cp, D)
    k = pl.program_id(1)

    @pl.when(k == 0)
    def _():
        acc_ref[...] = jnp.zeros_like(acc_ref)

    x = x_ref[...]
    g = jax.lax.dot_general(x, wg_ref[...], (((1,), (1,)), ((), ())),
                            preferred_element_type=jnp.float32)   # (Cp, tH)
    u = jax.lax.dot_general(x, wu_ref[...], (((1,), (1,)), ((), ())),
                            preferred_element_type=jnp.float32)
    h = (g * jax.nn.sigmoid(g)) * u                                # SiLU(g) * u, f32
    # partial down-projection for this H tile, accumulated in f32
    acc_ref[...] += jax.lax.dot_general(
        h.astype(wd_ref.dtype), wd_ref[...], (((1,), (1,)), ((), ())),
        preferred_element_type=jnp.float32)                        # (Cp, D)

    @pl.when(k == pl.num_programs(1) - 1)
    def _():
        o_ref[...] = (acc_ref[...] * s_ref[...]).astype(o_ref.dtype)


def shared_mlp_kernel(x_ref, wg_ref, wu_ref, wd_ref, yr_ref, o_ref):
    # x: (tn, D), wg/wu: (Hs, D), wd: (D, Hs), yr (routed y): (tn, D)
    x = x_ref[...]
    g = jax.lax.dot_general(x, wg_ref[...], (((1,), (1,)), ((), ())),
                            preferred_element_type=jnp.float32)
    u = jax.lax.dot_general(x, wu_ref[...], (((1,), (1,)), ((), ())),
                            preferred_element_type=jnp.float32)
    h = (g * jax.nn.sigmoid(g)) * u
    y = jax.lax.dot_general(h.astype(wd_ref.dtype), wd_ref[...],
                            (((1,), (1,)), ((), ())),
                            preferred_element_type=jnp.float32)
    o_ref[...] = (yr_ref[...].astype(jnp.float32) + y).astype(o_ref.dtype)


# ----------------------------- wrappers -----------------------------------

def _gate_scores(x_flat, w_gate):
    # -> (E, N) f32 scores (transposed, lane-dense along tokens)
    N, D = x_flat.shape
    E = w_gate.shape[0]
    tn = _pick_tile(N, 512)
    return pl.pallas_call(
        gate_kernel,
        out_shape=jax.ShapeDtypeStruct((E, N), jnp.float32),
        grid=(N // tn,),
        in_specs=[pl.BlockSpec((tn, D), lambda i: (i, 0)),
                  pl.BlockSpec((E, D), lambda i: (0, 0))],
        out_specs=pl.BlockSpec((E, tn), lambda i: (0, i)),
        compiler_params=pltpu.CompilerParams(
            dimension_semantics=("parallel",),
            vmem_limit_bytes=_VMEM_LIMIT_BYTES),
    )(x_flat, w_gate)


def _routed_experts(x_gathered, wg, wu, wd, scores):
    # x_gathered: (E, Cp, D), wg/wu: (E, H, D), wd: (E, D, H), scores: (E, Cp, 1) f32
    E, Cp, D = x_gathered.shape
    H = wg.shape[1]
    tH = _pick_tile(H, 512)
    return pl.pallas_call(
        expert_mlp_kernel,
        out_shape=jax.ShapeDtypeStruct((E, Cp, D), x_gathered.dtype),
        grid=(E, H // tH),
        in_specs=[
            pl.BlockSpec((None, Cp, D), lambda e, k: (e, 0, 0)),
            pl.BlockSpec((None, tH, D), lambda e, k: (e, k, 0)),
            pl.BlockSpec((None, tH, D), lambda e, k: (e, k, 0)),
            pl.BlockSpec((None, D, tH), lambda e, k: (e, 0, k)),
            pl.BlockSpec((None, Cp, 1), lambda e, k: (e, 0, 0)),
        ],
        out_specs=pl.BlockSpec((None, Cp, D), lambda e, k: (e, 0, 0)),
        scratch_shapes=[pltpu.VMEM((Cp, D), jnp.float32)],
        compiler_params=pltpu.CompilerParams(
            dimension_semantics=("parallel", "arbitrary"),
            vmem_limit_bytes=_VMEM_LIMIT_BYTES),
    )(x_gathered, wg, wu, wd, scores)


def _shared_plus_routed(x_flat, wg_s, wu_s, wd_s, y_routed):
    N, D = x_flat.shape
    Hs = wg_s.shape[0]
    tn = _pick_tile(N, 256)
    return pl.pallas_call(
        shared_mlp_kernel,
        out_shape=jax.ShapeDtypeStruct((N, D), x_flat.dtype),
        grid=(N // tn,),
        in_specs=[pl.BlockSpec((tn, D), lambda i: (i, 0)),
                  pl.BlockSpec((Hs, D), lambda i: (0, 0)),
                  pl.BlockSpec((Hs, D), lambda i: (0, 0)),
                  pl.BlockSpec((D, Hs), lambda i: (0, 0)),
                  pl.BlockSpec((tn, D), lambda i: (i, 0))],
        out_specs=pl.BlockSpec((tn, D), lambda i: (i, 0)),
        # Accumulate the shared MLP into y_routed's HBM buffer (P8).
        input_output_aliases={4: 0},
        compiler_params=pltpu.CompilerParams(
            dimension_semantics=("parallel",),
            vmem_limit_bytes=_VMEM_LIMIT_BYTES),
    )(x_flat, wg_s, wu_s, wd_s, y_routed)


def sparse_ec_moe_block(hidden_states, params, num_experts_per_tok=2):
    """Forward pass of SparseECMoeBlock (deepk=1, num_sub_tokens=1, ffn_type='glu')."""
    # TODO(synk): only the default path (deepk=1, num_sub_tokens=1, 'glu') is implemented.
    B, L, D = hidden_states.shape
    dtype = hidden_states.dtype
    x_flat = hidden_states.reshape(-1, D)
    N = x_flat.shape[0]
    E = params["w_gate"].shape[0]

    # --- gate: sigmoid(x @ Wg^T), emitted as (E, N) (Pallas, lane-dense) ---
    scores_t = _gate_scores(x_flat, params["w_gate"])                 # (E, N) f32

    # --- expert-choice top-k over tokens (plain JAX glue) ---
    capacity = math.ceil(N / E * num_experts_per_tok)
    topk_score, topk_ids = jax.lax.top_k(scores_t, capacity)          # (E, C) each

    # pad capacity to a sublane multiple for MXU/M-dim utilization;
    # padded slots route token 0 with score 0.0 -> contribute nothing.
    sub = 16 if dtype == jnp.bfloat16 else 8
    C_pad = _round_up(max(capacity, 1), sub)
    pad = C_pad - capacity
    if pad:
        topk_ids = jnp.pad(topk_ids, ((0, 0), (0, pad)))
        topk_score = jnp.pad(topk_score, ((0, 0), (0, pad)))

    # --- gather tokens per expert (plain JAX glue) ---
    # TODO(synk): fuse the gather via PrefetchScalarGridSpec / manual DMA gather
    # to avoid materializing (E, C, D) in HBM.
    x_gathered = jnp.take(x_flat, topk_ids, axis=0)                   # (E, Cp, D)

    # --- per-expert GLU MLP, H-tiled, scaled by routing score (Pallas hot path) ---
    expert_out = _routed_experts(
        x_gathered,
        params["w_gate_proj"], params["w_up_proj"], params["w_down_proj"],
        topk_score[..., None].astype(jnp.float32),
    )                                                                  # (E, Cp, D), input dtype

    # --- scatter-add back to token positions (plain JAX glue) ---
    # TODO(synk): replace with a Pallas combine kernel (input_output_aliases) or
    # an MXU dispatch-matmul combine; XLA scatter-add is HBM-bound.
    y_routed = jnp.zeros((N, D), dtype).at[topk_ids.reshape(-1)].add(
        expert_out.reshape(-1, D))

    # --- shared experts on the identity + residual add (Pallas, aliased into y_routed) ---
    y = _shared_plus_routed(
        x_flat, params["w_gate_s"], params["w_up_s"], params["w_down_s"], y_routed)

    return y.reshape(B, L, D)


# ----------------------------- reference (pure JAX, f32 math) --------------

def reference(hidden_states, params, num_experts_per_tok=2):
    f32 = lambda a: a.astype(jnp.float32)
    B, L, D = hidden_states.shape
    x_flat = f32(hidden_states.reshape(-1, D))
    N = x_flat.shape[0]
    E = params["w_gate"].shape[0]
    scores = jax.nn.sigmoid(x_flat @ f32(params["w_gate"]).T)
    capacity = math.ceil(N / E * num_experts_per_tok)
    topk_score, topk_ids = jax.lax.top_k(scores.T, capacity)
    y = jnp.zeros_like(x_flat)
    for e in range(E):
        xs = x_flat[topk_ids[e]]
        g = xs @ f32(params["w_gate_proj"][e]).T
        u = xs @ f32(params["w_up_proj"][e]).T
        out = (jax.nn.silu(g) * u) @ f32(params["w_down_proj"][e]).T
        y = y.at[topk_ids[e]].add(out * topk_score[e][:, None])
    g = x_flat @ f32(params["w_gate_s"]).T
    u = x_flat @ f32(params["w_up_s"]).T
    shared = (jax.nn.silu(g) * u) @ f32(params["w_down_s"]).T
    return (y + shared).reshape(B, L, D)


# ----------------------------- main ----------------------------------------

if __name__ == "__main__":
    # Small shapes consistent with the module.
    B, L, D = 2, 8, 32
    mlp_ratio = 4
    E = 16                          # num_experts
    top_k = 2                       # num_experts_per_tok
    n_shared = 2
    H = mlp_ratio * D               # expert_hidden_dim = 128
    Hs = H * n_shared // mlp_ratio  # shared intermediate = 64

    key = jax.random.PRNGKey(0)
    keys = jax.random.split(key, 8)

    def uinit(k, shape, fan_in):
        bound = 1.0 / math.sqrt(fan_in)
        return jax.random.uniform(k, shape, jnp.float32, -bound, bound)

    params_f32 = {
        "w_gate":      uinit(keys[0], (E, D), D),       # ECMoEGate weight
        "w_gate_proj": uinit(keys[1], (E, H, D), D),    # per-expert gate_proj
        "w_up_proj":   uinit(keys[2], (E, H, D), D),    # per-expert up_proj
        "w_down_proj": uinit(keys[3], (E, D, H), H),    # per-expert down_proj
        "w_gate_s":    uinit(keys[4], (Hs, D), D),      # shared gate_proj
        "w_up_s":      uinit(keys[5], (Hs, D), D),      # shared up_proj
        "w_down_s":    uinit(keys[6], (D, Hs), Hs),     # shared down_proj
    }
    x_f32 = jax.random.normal(keys[7], (B, L, D), jnp.float32)

    # bf16 inputs/weights for the MXU; kernels accumulate in f32.
    dtype = jnp.bfloat16
    params = {k: v.astype(dtype) for k, v in params_f32.items()}
    x = x_f32.astype(dtype)

    out = sparse_ec_moe_block(x, params, num_experts_per_tok=top_k)
    out = jax.block_until_ready(out)

    # Reference computed in f32 from the same bf16-quantized values.
    ref = reference(x, params, num_experts_per_tok=top_k)

    assert out.shape == (B, L, D)
    err = float(jnp.max(jnp.abs(out.astype(jnp.float32) - ref)))
    # bf16 I/O with f32 accumulation: allow bf16-level tolerance.
    assert err < 3e-2, f"max abs diff {err}"

    print("KERNEL_OK")
</pallas_src>

<mosaic_0001>
module attributes {stable_mosaic.version = 11 : i64} {
  func.func @gate_kernel(%arg0: i32, %arg1: memref<16x32xbf16, #tpu.memory_space<vmem>>, %arg2: memref<16x32xbf16, #tpu.memory_space<vmem>>, %arg3: memref<16x16xf32, #tpu.memory_space<vmem>>) attributes {dimension_semantics = [#tpu.dimension_semantics<parallel>], iteration_bounds = array<i64: 1>, scalar_prefetch = 0 : i64, scratch_operands = 0 : i64, tpu.core_type = #tpu.core_type<tc>, window_params = [{transform_indices = @transform_0, window_bounds = array<i64: 16, 32>}, {pipeline_mode = #tpu.pipeline_mode<synchronous>, transform_indices = @transform_1, window_bounds = array<i64: 16, 32>}, {transform_indices = @transform_2, window_bounds = array<i64: 16, 16>}]} {
    %c0 = arith.constant 0 : index
    %c0_0 = arith.constant 0 : index
    %0 = vector.load %arg2[%c0, %c0_0] : memref<16x32xbf16, #tpu.memory_space<vmem>>, vector<16x32xbf16>
    %c0_1 = arith.constant 0 : index
    %c0_2 = arith.constant 0 : index
    %1 = vector.load %arg1[%c0_1, %c0_2] : memref<16x32xbf16, #tpu.memory_space<vmem>>, vector<16x32xbf16>
    %cst = arith.constant dense<0.000000e+00> : vector<16x16xf32>
    %2 = tpu.matmul %0, %1, %cst {dimension_numbers = #tpu.dot_dimension_numbers<[1], [1], [0], [0], [0, 0, 1, 0], [], []>} : vector<16x32xbf16>, vector<16x32xbf16>, vector<16x16xf32> -> vector<16x16xf32>
    %3 = arith.negf %2 : vector<16x16xf32>
    %4 = math.exp %3 : vector<16x16xf32>
    %cst_3 = arith.constant 1.000000e+00 : f32
    %5 = vector.broadcast %cst_3 : f32 to vector<16x16xf32>
    %6 = arith.addf %5, %4 : vector<16x16xf32>
    %7 = arith.divf %5, %6 : vector<16x16xf32>
    %c0_4 = arith.constant 0 : index
    %c0_5 = arith.constant 0 : index
    %8 = vector.load %arg3[%c0_4, %c0_5] : memref<16x16xf32, #tpu.memory_space<vmem>>, vector<16x16xf32>
    tpu.vector_store %arg3[%c0_4, %c0_5], %7 {strides = array<i32>} : memref<16x16xf32, #tpu.memory_space<vmem>>, vector<16x16xf32>,
    return
  }
  func.func @transform_0(%arg0: i32) -> (i32, i32) {
    %c0_i32 = arith.constant 0 : i32
    %c0_i32_0 = arith.constant 0 : i32
    return %arg0, %c0_i32 : i32, i32
  }
  func.func @transform_1(%arg0: i32) -> (i32, i32) {
    %c0_i32 = arith.constant 0 : i32
    %c0_i32_0 = arith.constant 0 : i32
    %c0_i32_1 = arith.constant 0 : i32
    return %c0_i32, %c0_i32_0 : i32, i32
  }
  func.func @transform_2(%arg0: i32) -> (i32, i32) {
    %c0_i32 = arith.constant 0 : i32
    %c0_i32_0 = arith.constant 0 : i32
    return %c0_i32, %arg0 : i32, i32
  }
}

</mosaic_0001>

<bundles_post_ra>
// kernel: tpu_custom_call.1
= control target key start
LH: loop header
LB: loop body
LE: loop exit
PB: predicated region body
PF: predicated region fallthrough
CT: control target
= control target key end

     0   :  { %7 = vsyncpa [#allocation3], 0  ;;  %s300_s0 = inlined_call_operand.hbm [shape: bf16[16,32], index: 0, kind: input, shape index: {}]   ;;  %s301_s1 = inlined_call_operand.hbm [shape: bf16[16,32], index: 1, kind: input, shape index: {}]   ;;  %s302_s2 = inlined_call_operand.hbm [shape: f32[16,16], index: 2, kind: output, shape index: {}]  }
   0x1   :  { %8 = vsyncpa [#allocation6], 0 }
   0x2   :  { %9 = vsyncpa [#allocation4], 0  ;;  %s240_s9 = smov [#allocation2]   ;;  %s168_s13 = scalar_lea.hbm %s300_s0, 128 }
   0x3   :  { %s15_s10 = sshll.u32 %s240_s9, 4  ;;  %p169_p0 = scmp.ne.s32.totalorder %s300_s0, %s168_s13  ;;  %s16_s10 = int_to_ptr.vmem [resolvable:$true] %s15_s10 }
   0x4   :  { %p172_p1 = scmp.lt.u32.totalorder %s168_s13, %s300_s0 }
   0x6   :  { %p174_p2 = pnand %p172_p1, %p169_p0 }
   0x8   :  { %177 = shalt.err (!%p174_p2)
}
   0x9   :  { %s178_s18 = scalar_lea.vmem %s16_s10, 128  ;;  %p183_p4 = scmp.lt.s32.totalorder %s16_s10, %s16_s10 }
   0xa   :  { %p179_p3 = scmp.ne.s32.totalorder %s16_s10, %s178_s18  ;;  %p184_p5 = scmp.lt.s32.totalorder %s178_s18, %s178_s18 }
   0xc   :  { %p185_p6 = por %p184_p5, %p183_p4 }
   0xe   :  { %p186_p7 = pnand %p185_p6, %p179_p3 }
  0x10   :  { %189 = shalt.err (!%p186_p7)
}
  0x11   :  { %s241_s19 = smov 64   ;;  %s242_s20 = smov 4  }
  0x12   :  { %21 = dma.hbm_to_vmem [thread:$0]  %s300_s0, 128, %s16_s10, [#allocation3], %s241_s19, %s241_s19, %s242_s20  }
  0x13   :  { %s243_s23 = smov [#allocation5]   ;;  %s190_s27 = scalar_lea.hbm %s301_s1, 128 }
  0x14   :  { %s27_s24 = sshll.u32 %s243_s23, 4  ;;  %p191_p8 = scmp.ne.s32.totalorder %s301_s1, %s190_s27  ;;  %s28_s24 = int_to_ptr.vmem [resolvable:$true] %s27_s24 }
  0x15   :  { %p194_p9 = scmp.lt.u32.totalorder %s190_s27, %s301_s1 }
  0x17   :  { %p196_p10 = pnand %p194_p9, %p191_p8 }
  0x19   :  { %199 = shalt.err (!%p196_p10)
}
  0x1a   :  { %s200_s4 = scalar_lea.vmem %s28_s24, 128  ;;  %p205_p12 = scmp.lt.s32.totalorder %s28_s24, %s28_s24 }
  0x1b   :  { %p201_p11 = scmp.ne.s32.totalorder %s28_s24, %s200_s4  ;;  %p206_p13 = scmp.lt.s32.totalorder %s200_s4, %s200_s4 }
  0x1d   :  { %p207_p0 = por %p206_p13, %p205_p12 }
  0x1f   :  { %p208_p1 = pnand %p207_p0, %p201_p11 }
  0x21   :  { %211 = shalt.err (!%p208_p1)
}
  0x22   :  { %33 = dma.hbm_to_vmem [thread:$0]  %s301_s1, 128, %s28_s24, [#allocation6], %s241_s19, %s241_s19, %s242_s20  }
  0x23   :  { %234 = dma.done.wait [#allocation3], 128  }
  0x24   :  { %235 = vsyncadd [#allocation3], 4294967168 }
  0x25   :  { %236 = dma.done.wait [#allocation6], 128  }
  0x26   :  { %237 = vsyncadd [#allocation6], 4294967168  ;;  %v244_v0 = vmov 0.0   ;;  %vm245_vm0 = vmmov 0   ;;  %vm55_vm1 = vcmask 261120   ;;  %v158_v1 = vld [vmem:[#allocation2] sm:$0xff]  }
  0x27   :  { %143 = vmatprep.subr.bf16.mxu0 %v244_v0  ;;  %145 = vmatprep.mubr.msk.bf16.mxu0 %vm245_vm0, %v244_v0  ;;  %v60_v2 = vsel %vm55_vm1, %v158_v1, 0  ;;  %v159_v3 = vld [vmem:[#allocation5] sm:$0xff]   ;;  %s246_s1 = smov [#allocation7]   ;;  %vm115_vm2 = vcmask 130048  }
  0x28   :  { %144 = vmatpush3.bf16.xpose.msra.mxu0 %v60_v2  ;;  %s123_s6 = sshll.u32 %s246_s1, 4  ;;  %s124_s6 = int_to_ptr.vmem [resolvable:$true] %s123_s6 }
  0x29   :  { %s212_s7 = scalar_lea.vmem %s124_s6, 256  ;;  %p217_p3 = scmp.lt.s32.totalorder %s124_s6, %s124_s6 }
  0x2a   :  { %p213_p2 = scmp.ne.s32.totalorder %s124_s6, %s212_s7  ;;  %p218_p4 = scmp.lt.s32.totalorder %s212_s7, %s212_s7 }
  0x2c   :  { %p219_p5 = por %p218_p4, %p217_p3 }
  0x2e   :  { %p220_p6 = pnand %p219_p5, %p213_p2 }
  0x2f   :  { %146 = vmatmul.mubr.msk.bf16.vlgmr.msra.gmra.mrb[0].mxu0 %vm55_vm1, %v159_v3 }
 0x102   :  { %v96_v4 = vpop.f32.mrb[0].mxu0 }
 0x103   :  { %v139_v5 = vmul.f32 -1.442695, %v96_v4  ;;  %v147_v6 = vpop.f32.mrb[1].mxu0 }
 0x104   :  { %v99_v7 = vpop.f32.mrb[2].mxu0 }
 0x105   :  { %160 = vpow2.f32 %v139_v5  ;;  %v140_v8 = vmul.f32 -1.442695, %v99_v7  ;;  %v148_v9 = vpop.f32.mrb[3].mxu0 }
 0x107   :  { %162 = vpow2.f32 %v140_v8 }
 0x10f   :  { %v161_v10 = vpop.eup %160 }
 0x110   :  { %v109_v11 = vadd.f32 1.0, %v161_v10 }
 0x111   :  { %v163_v12 = vpop.eup %162 }
 0x112   :  { %164 = vrcp.f32 %v109_v11  ;;  %v110_v13 = vadd.f32 1.0, %v163_v12 }
 0x114   :  { %166 = vrcp.f32 %v110_v13 }
 0x11c   :  { %v165_v14 = vpop.eup %164 }
 0x11d   :  { %116 = vst.msk [vmem:[#allocation7] sm:$0xff] %vm115_vm2, %v165_v14 }
 0x11e   :  { %v167_v15 = vpop.eup %166 }
 0x11f   :  { %117 = vst.msk [vmem:[#allocation7 + $0x8] sm:$0xff] %vm115_vm2, %v167_v15 }
 0x120   :  { %223 = shalt.err (!%p220_p6)
}
 0x121   :  { %s224_s10 = scalar_lea.hbm %s302_s2, 256 }
 0x122   :  { %p225_p7 = scmp.ne.s32.totalorder %s302_s2, %s224_s10  ;;  %p228_p8 = scmp.lt.u32.totalorder %s224_s10, %s302_s2 }
 0x124   :  { %p230_p9 = pnand %p228_p8, %p225_p7 }
 0x126   :  { %233 = shalt.err (!%p230_p9)
}
 0x127   :  { %s247_s15 = smov 128   ;;  %s248_s16 = smov 8  }
 0x128   :  { %129 = dma.vmem_to_hbm [thread:$0]  %s124_s6, 256, %s302_s2, [#allocation4], %s247_s15, %s247_s15, %s248_s16  }
 0x129   :  { %238 = dma.done.wait [#allocation4], 256  }
 0x12a   :  { %239 = vsyncadd [#allocation4], 4294967040 }
 0x12b   :  { %133 = vsyncpa [#allocation3], 1 }
 0x12c   :  { %134 = vsyncpa [#allocation6], 1 }
 0x12d   :  { %135 = vsyncpa [#allocation4], 1 }

</bundles_post_ra>
